<compile_context>
chip_gen: v5e
topology: v5e:2x2
jax: 0.10.0
libtpu: 0.0.40
codegen_flags: <defaults>
</compile_context>

<pallas_src>
import jax
import jax.numpy as jnp
from jax.experimental import pallas as pl
from jax.experimental.pallas import tpu as pltpu


def mlp_kernel(x_ref, w1_ref, b1_ref, w2_ref, b2_ref, o_ref):
    # Layer 0: Linear(D_in -> H) on the MXU, full f32 precision / f32 accumulation.
    h = jnp.dot(
        x_ref[...], w1_ref[...],
        preferred_element_type=jnp.float32,
        precision=jax.lax.Precision.HIGHEST,
    )
    # Layer 1: bias add + ReLU (VPU work, hidden under MXU/DMA slack). Kept in f32 —
    # v5e's VPU has no bf16 arithmetic, and f32 here is free on v6e/v7x too.
    h = jnp.maximum(h + b1_ref[...], 0.0)
    # Layer 2: Linear(H -> D_out).
    y = jnp.dot(
        h, w2_ref[...],
        preferred_element_type=jnp.float32,
        precision=jax.lax.Precision.HIGHEST,
    )
    o_ref[...] = (y + b2_ref[...]).astype(o_ref.dtype)


@jax.jit
def my_sequential_forward(x, w1, b1, w2, b2):
    """MySequential forward: relu(x @ w1 + b1) @ w2 + b2 as a single Pallas kernel.

    x : [B, D_in] f32    w1: [D_in, H] f32    b1: [H] f32
    w2: [H, D_out] f32   b2: [D_out] f32      returns [B, D_out] f32
    """
    B, D_in = x.shape
    H = w1.shape[1]
    D_out = w2.shape[1]

    # Metadata-only reshapes (bitcasts) so biases broadcast as (1, N) rows in-kernel.
    b1_2d = b1.reshape(1, H)
    b2_2d = b2.reshape(1, D_out)

    # Full-array blocks resident in VMEM; no grid, no software pipeline.
    vmem_spec = pl.BlockSpec(memory_space=pltpu.MemorySpace.VMEM)

    flops = 2 * (B * D_in * H + B * H * D_out)
    bytes_accessed = 4 * (x.size + w1.size + b1.size + w2.size + b2.size + B * D_out)

    return pl.pallas_call(
        mlp_kernel,
        out_shape=jax.ShapeDtypeStruct((B, D_out), jnp.float32),
        in_specs=[vmem_spec] * 5,
        out_specs=vmem_spec,
        cost_estimate=pl.CostEstimate(
            flops=flops, transcendentals=0, bytes_accessed=bytes_accessed
        ),
    )(x, w1, b1_2d, w2, b2_2d)


if __name__ == "__main__":
    key = jax.random.PRNGKey(0)
    k_x, k_w1, k_b1, k_w2, k_b2 = jax.random.split(key, 5)

    B, D_in, H, D_out = 2, 20, 256, 10

    # Input matching `X = torch.rand(2, 20)` (uniform [0, 1)).
    x = jax.random.uniform(k_x, (B, D_in), dtype=jnp.float32)

    # PyTorch nn.Linear default init: U(-1/sqrt(fan_in), 1/sqrt(fan_in)).
    bound1 = 1.0 / jnp.sqrt(jnp.float32(D_in))
    w1 = jax.random.uniform(k_w1, (D_in, H), jnp.float32, -bound1, bound1)
    b1 = jax.random.uniform(k_b1, (H,), jnp.float32, -bound1, bound1)

    bound2 = 1.0 / jnp.sqrt(jnp.float32(H))
    w2 = jax.random.uniform(k_w2, (H, D_out), jnp.float32, -bound2, bound2)
    b2 = jax.random.uniform(k_b2, (D_out,), jnp.float32, -bound2, bound2)

    out = jax.block_until_ready(my_sequential_forward(x, w1, b1, w2, b2))

    # Pure-JAX f32 reference of the sequential forward semantics.
    ref = jnp.maximum(x @ w1 + b1, 0.0) @ w2 + b2
    assert out.shape == (B, D_out), out.shape
    # f32 operands + HIGHEST-precision MXU passes -> tight agreement with the reference.
    assert jnp.allclose(out, ref, atol=1e-3, rtol=1e-3), "mismatch vs reference"

    print("KERNEL_OK")
</pallas_src>

<mosaic_0001>
module attributes {stable_mosaic.version = 11 : i64} {
  func.func @mlp_kernel(%arg0: memref<2x20xf32, #tpu.memory_space<vmem>>, %arg1: memref<20x256xf32, #tpu.memory_space<vmem>>, %arg2: memref<1x256xf32, #tpu.memory_space<vmem>>, %arg3: memref<256x10xf32, #tpu.memory_space<vmem>>, %arg4: memref<1x10xf32, #tpu.memory_space<vmem>>, %arg5: memref<2x10xf32, #tpu.memory_space<vmem>>) attributes {dimension_semantics = [], scalar_prefetch = 0 : i64, scratch_operands = 0 : i64, tpu.core_type = #tpu.core_type<tc>} {
    %c0 = arith.constant 0 : index
    %c0_0 = arith.constant 0 : index
    %0 = vector.load %arg0[%c0, %c0_0] : memref<2x20xf32, #tpu.memory_space<vmem>>, vector<2x20xf32>
    %c0_1 = arith.constant 0 : index
    %c0_2 = arith.constant 0 : index
    %1 = vector.load %arg1[%c0_1, %c0_2] : memref<20x256xf32, #tpu.memory_space<vmem>>, vector<20x256xf32>
    %cst = arith.constant dense<0.000000e+00> : vector<2x256xf32>
    %2 = tpu.matmul %0, %1, %cst {dimension_numbers = #tpu.dot_dimension_numbers<[1], [0], [0], [1], [0, 0, 1, 1], [], []>, precision = #tpu.contract_precision<fp32>} : vector<2x20xf32>, vector<20x256xf32>, vector<2x256xf32> -> vector<2x256xf32>
    %c0_3 = arith.constant 0 : index
    %c0_4 = arith.constant 0 : index
    %3 = vector.load %arg2[%c0_3, %c0_4] : memref<1x256xf32, #tpu.memory_space<vmem>>, vector<1x256xf32>
    %4 = vector.broadcast %3 : vector<1x256xf32> to vector<2x256xf32>
    %5 = arith.addf %2, %4 : vector<2x256xf32>
    %cst_5 = arith.constant 0.000000e+00 : f32
    %6 = vector.broadcast %cst_5 : f32 to vector<2x256xf32>
    %7 = arith.maximumf %5, %6 : vector<2x256xf32>
    %c0_6 = arith.constant 0 : index
    %c0_7 = arith.constant 0 : index
    %8 = vector.load %arg3[%c0_6, %c0_7] : memref<256x10xf32, #tpu.memory_space<vmem>>, vector<256x10xf32>
    %cst_8 = arith.constant dense<0.000000e+00> : vector<2x10xf32>
    %9 = tpu.matmul %7, %8, %cst_8 {dimension_numbers = #tpu.dot_dimension_numbers<[1], [0], [0], [1], [0, 0, 1, 1], [], []>, precision = #tpu.contract_precision<fp32>} : vector<2x256xf32>, vector<256x10xf32>, vector<2x10xf32> -> vector<2x10xf32>
    %c0_9 = arith.constant 0 : index
    %c0_10 = arith.constant 0 : index
    %10 = vector.load %arg4[%c0_9, %c0_10] : memref<1x10xf32, #tpu.memory_space<vmem>>, vector<1x10xf32>
    %11 = vector.broadcast %10 : vector<1x10xf32> to vector<2x10xf32>
    %12 = arith.addf %9, %11 : vector<2x10xf32>
    %c0_11 = arith.constant 0 : index
    %c0_12 = arith.constant 0 : index
    %13 = vector.load %arg5[%c0_11, %c0_12] : memref<2x10xf32, #tpu.memory_space<vmem>>, vector<2x10xf32>
    tpu.vector_store %arg5[%c0_11, %c0_12], %12 {strides = array<i32>} : memref<2x10xf32, #tpu.memory_space<vmem>>, vector<2x10xf32>,
    return
  }
}

</mosaic_0001>

<bundles_post_ra>
// kernel: my_sequential_forward.1
= control target key start
LH: loop header
LB: loop body
LE: loop exit
PB: predicated region body
PF: predicated region fallthrough
CT: control target
= control target key end

     0   :  { %vm38_vm0 = vcmask 1043456   ;;  %vm34_vm1 = vcmask 162816   ;;  %s1871_s0 = inlined_call_operand.vmem [shape: f32[2,20], index: 0, kind: input, shape index: {}]   ;;  %s1872_s1 = inlined_call_operand.vmem [shape: f32[20,256], index: 1, kind: input, shape index: {}]   ;;  %s1873_s2 = inlined_call_operand.vmem [shape: f32[1,256], index: 2, kind: input, shape index: {}]   ;;  %s1874_s3 = inlined_call_operand.vmem [shape: f32[256,10], index: 3, kind: input, shape index: {}]   ;;  %s1875_s4 = inlined_call_operand.vmem [shape: f32[1,10], index: 4, kind: input, shape index: {}]   ;;  %s1876_s5 = inlined_call_operand.hbm [shape: f32[2,10], index: 5, kind: output, shape index: {}]  }
   0x1   :  { %v26_v0 = vld [vmem:[%s1872_s1 + $0x20] sm:$0xf]  ;;  %v27_v1 = vld [vmem:[%s1872_s1 + $0x28] sm:$0xf]  ;;  %v24_v2 = vld [vmem:[%s1872_s1 + $0x10] sm:$0xff] }
   0x2   :  { %v40_v3 = vsel %vm38_vm0, %v26_v0, 0  ;;  %v43_v4 = vsel %vm38_vm0, %v27_v1, 0  ;;  %v1195_v5 = vand.u32 4294901760, %v24_v2  ;;  %v22_v6 = vld [vmem:[%s1872_s1] sm:$0xff]  ;;  %v25_v11 = vld [vmem:[%s1872_s1 + $0x18] sm:$0xff]  ;;  %v23_v12 = vld [vmem:[%s1872_s1 + $0x8] sm:$0xff] }
   0x3   :  { %v21_v7 = vld [vmem:[%s1871_s0] sm:$0x3]  ;;  %v1203_v8 = vand.u32 4294901760, %v40_v3  ;;  %v1205_v9 = vand.u32 4294901760, %v22_v6  ;;  %v1207_v10 = vand.u32 4294901760, %v43_v4  ;;  %v1216_v15 = vand.u32 4294901760, %v25_v11 }
   0x4   :  { %v93_v13 = vsub.f32 %v24_v2, %v1195_v5  ;;  %v36_v14 = vsel %vm34_vm1, %v21_v7, 0  ;;  %v1218_v16 = vand.u32 4294901760, %v23_v12 }
   0x5   :  { %v87_v17 = vsub.f32 %v40_v3, %v1203_v8  ;;  %59 = vmatpush.msra.mxu0 %v1203_v8  ;;  %151 = vmatpush.msra.mxu3 %v1203_v8  ;;  %v99_v18 = vsub.f32 %v22_v6, %v1205_v9  ;;  %v1224_v19 = vand.u32 4294901760, %v36_v14  ;;  %v1227_v20 = vsub.f32 %v43_v4, %v1207_v10 }
   0x6   :  { %v94_v21 = vand.u32 4294901760, %v93_v13  ;;  %v1230_v22 = vsub.f32 %v25_v11, %v1216_v15  ;;  %v1233_v23 = vsub.f32 %v23_v12, %v1218_v16 }
   0x7   :  { %10 = vsyncpa [#allocation3], 0  ;;  %124 = vmatpush.msra.mxu2 %v87_v17  ;;  %61 = vmatpush.msra.mxu0 %v1195_v5  ;;  %v88_v24 = vand.u32 4294901760, %v87_v17  ;;  %v1237_v25 = vsub.f32 %v36_v14, %v1224_v19  ;;  %v100_v26 = vand.u32 4294901760, %v99_v18  ;;  %v260_v27 = vand.u32 4294901760, %v1227_v20  ;;  %v406_v28 = vld [vmem:[%s1874_s3 + $0x78] sm:$0xff] }
   0x8   :  { %153 = vmatpush.msra.mxu3 %v1195_v5  ;;  %v95_v29 = vsub.f32 %v93_v13, %v94_v21  ;;  %v266_v30 = vand.u32 4294901760, %v1230_v22  ;;  %v272_v31 = vand.u32 4294901760, %v1233_v23  ;;  %v405_v36 = vld [vmem:[%s1874_s3 + $0x70] sm:$0xff]  ;;  %v1258_v39 = vand.u32 4294901760, %v406_v28  ;;  %v404_v46 = vld [vmem:[%s1874_s3 + $0x68] sm:$0xff]  ;;  %v403_v50 = vld [vmem:[%s1874_s3 + $0x60] sm:$0xff] }
   0x9   :  { %127 = vmatpush.msra.mxu2 %v93_v13  ;;  %v89_v32 = vsub.f32 %v87_v17, %v88_v24  ;;  %63 = vmatpush.msra.mxu0 %v1205_v9  ;;  %v1248_v33 = vand.u32 4294901760, %v1237_v25  ;;  %v101_v34 = vsub.f32 %v99_v18, %v100_v26  ;;  %v261_v35 = vsub.f32 %v1227_v20, %v260_v27  ;;  %v402_v54 = vld [vmem:[%s1874_s3 + $0x58] sm:$0xff]  ;;  %v401_v57 = vld [vmem:[%s1874_s3 + $0x50] sm:$0xff]  ;;  %v400_v60 = vld [vmem:[%s1874_s3 + $0x48] sm:$0xff]  ;;  %s1118_s20 = sshll.u32 %s1876_s5, 4  ;;  %s1119_s20 = int_to_ptr.hbm [resolvable:$true] %s1118_s20 }
   0xa   :  { %v96_v37 = vand.u32 4294901760, %v95_v29  ;;  %155 = vmatpush.msra.mxu3 %v1205_v9  ;;  %v267_v38 = vsub.f32 %v1230_v22, %v266_v30  ;;  %v273_v43 = vsub.f32 %v1233_v23, %v272_v31  ;;  %v1267_v45 = vand.u32 4294901760, %v405_v36  ;;  %v399_v0 = vld [vmem:[%s1874_s3 + $0x40] sm:$0xff]  ;;  %v398_v7 = vld [vmem:[%s1874_s3 + $0x38] sm:$0xff]  ;;  %v397_v12 = vld [vmem:[%s1874_s3 + $0x30] sm:$0xff] }
   0xb   :  { %179 = vmatpush.msrb.mxu0 %v88_v24  ;;  %v90_v40 = vand.u32 4294901760, %v89_v32  ;;  %130 = vmatpush.msra.mxu2 %v99_v18  ;;  %v67_v41 = vsub.f32 %v1237_v25, %v1248_v33  ;;  %v262_v42 = vand.u32 4294901760, %v261_v35  ;;  %v102_v48 = vand.u32 4294901760, %v101_v34  ;;  %v395_v24 = vld [vmem:[%s1874_s3 + $0x20] sm:$0xff]  ;;  %v394_v29 = vld [vmem:[%s1874_s3 + $0x18] sm:$0xff]  ;;  %v393_v35 = vld [vmem:[%s1874_s3 + $0x10] sm:$0xff] }
   0xc   :  { %159 = vmatmul.f32.vlgmr.msra.gmra.mxu3 %v1248_v33  ;;  %133 = vmatmul.f32.vlgmr.msra.gmra.mxu2 %v1237_v25  ;;  %v268_v44 = vand.u32 4294901760, %v267_v38  ;;  %v1274_v49 = vsub.f32 %v406_v28, %v1258_v39  ;;  %v274_v51 = vand.u32 4294901760, %v273_v43  ;;  %v1279_v52 = vand.u32 4294901760, %v404_v46 }
   0xd   :  { %183 = vmatpush.msrb.mxu0 %v94_v21  ;;  %91 = vmatpush.msra.mxu1 %v90_v40  ;;  %v68_v47 = vand.u32 4294901760, %v67_v41  ;;  %v1283_v53 = vsub.f32 %v405_v36, %v1267_v45  ;;  %v1289_v55 = vand.u32 4294901760, %v403_v50  ;;  %v1301_v59 = vand.u32 4294901760, %v402_v54 }
   0xe   :  { %231 = vmatpush.msrb.mxu2 %v1207_v10  ;;  %263 = vmatpush.msrb.mxu3 %v262_v42  ;;  %v470_v56 = vand.u32 4294901760, %v1274_v49  ;;  %v1299_v58 = vsub.f32 %v404_v46, %v1279_v52  ;;  %v1312_v63 = vand.u32 4294901760, %v401_v57  ;;  %v1322_v2 = vand.u32 4294901760, %v400_v60  ;;  %v392_v42 = vld [vmem:[%s1874_s3 + $0x8] sm:$0xff] }
   0xf   :  { %187 = vmatpush.msrb.mxu0 %v100_v26  ;;  %97 = vmatpush.msra.mxu1 %v96_v37  ;;  %v476_v61 = vand.u32 4294901760, %v1283_v53  ;;  %v1310_v62 = vsub.f32 %v403_v50, %v1289_v55  ;;  %v1328_v4 = vsub.f32 %v402_v54, %v1301_v59  ;;  %v1336_v6 = vand.u32 4294901760, %v399_v0  ;;  %v391_v50 = vld [vmem:[%s1874_s3] sm:$0xff] }
  0x10   :  { %69 = vmatmul.f32.vlgmr.msra.gmra.mxu0 %v68_v47  ;;  %233 = vmatpush.msrb.mxu2 %v1216_v15  ;;  %v471_v1 = vsub.f32 %v1274_v49, %v470_v56  ;;  %v482_v3 = vand.u32 4294901760, %v1299_v58  ;;  %v1351_v11 = vsub.f32 %v400_v60, %v1322_v2  ;;  %v1362_v17 = vand.u32 4294901760, %v398_v7 }
  0x11   :  { %269 = vmatpush.msrb.mxu3 %v268_v44  ;;  %103 = vmatpush.msra.mxu1 %v102_v48  ;;  %v494_v14 = vand.u32 4294901760, %v1328_v4  ;;  %v1408_v34 = vand.u32 4294901760, %v395_v24  ;;  %v1415_v36 = vand.u32 4294901760, %v394_v29  ;;  %v1453_v60 = vand.u32 4294901760, %v392_v42 }
  0x12   :  { %296 = vmatpush.msra.mxu0 %v1227_v20  ;;  %105 = vmatmul.f32.vlgmr.msra.gmra.mxu1 %v1224_v19  ;;  %v483_v13 = vsub.f32 %v1299_v58, %v482_v3  ;;  %v1367_v20 = vsub.f32 %v399_v0, %v1336_v6  ;;  %vm1109_vm2 = vcmask 74752  }
  0x13   :  { %235 = vmatpush.msrb.mxu2 %v1218_v16  ;;  %207 = vmatpush.msrb.mxu1 %v1203_v8  ;;  %v488_v8 = vand.u32 4294901760, %v1310_v62  ;;  %v495_v26 = vsub.f32 %v1328_v4, %v494_v14  ;;  %v1443_v48 = vsub.f32 %v394_v29, %v1415_v36  ;;  %v420_v29 = vld [vmem:[%s1874_s3 + $0xe8] sm:$0xff] }
  0x14   :  { %275 = vmatpush.msrb.mxu3 %v274_v51  ;;  %241 = vmatmul.f32.vlgmr.msrb.gmra.mxu2 %v68_v47  ;;  %v1438_v47 = vsub.f32 %v395_v24, %v1408_v34  ;;  %v1481_v24 = vsub.f32 %v392_v42, %v1453_v60  ;;  %v419_v42 = vld [vmem:[%s1874_s3 + $0xe0] sm:$0xff] }
  0x15   :  { %277 = vmatmul.f32.vlgmr.msrb.gmra.mxu3 %v1224_v19  ;;  %209 = vmatpush.msrb.mxu1 %v1195_v5  ;;  %v477_v5 = vsub.f32 %v1283_v53, %v476_v61  ;;  %v489_v21 = vsub.f32 %v1310_v62, %v488_v8  ;;  %v496_v37 = vand.u32 4294901760, %v495_v26 }
  0x16   :  { %351 = vmatpush.msra.mxu2 %v260_v27  ;;  %379 = vmatpush.msra.mxu3 %v1207_v10  ;;  %v1391_v27 = vsub.f32 %v398_v7, %v1362_v17 }
  0x17   :  { %299 = vmatpush.msra.mxu0 %v1230_v22  ;;  %211 = vmatpush.msrb.mxu1 %v1205_v9  ;;  %v1345_v9 = vsub.f32 %v401_v57, %v1312_v63  ;;  %v478_v18 = vand.u32 4294901760, %v477_v5 }
  0x18   :  { %189 = vmatmul.f32.vlgmr.msrb.gmra.mxu0 %v1224_v19  ;;  %355 = vmatpush.msra.mxu2 %v266_v30  ;;  %v490_v30 = vand.u32 4294901760, %v489_v21  ;;  %v518_v40 = vand.u32 4294901760, %v1391_v27 }
  0x19   :  { %323 = vmatpush.msra.mxu1 %v1207_v10  ;;  %381 = vmatpush.msra.mxu3 %v1216_v15  ;;  %v472_v10 = vand.u32 4294901760, %v471_v1  ;;  %v500_v22 = vand.u32 4294901760, %v1345_v9  ;;  %v422_v1 = vld [vmem:[%s1874_s3 + $0xf8] sm:$0xff] }
  0x1a   :  { %302 = vmatpush.msra.mxu0 %v1233_v23  ;;  %213 = vmatmul.f32.vlgmr.msrb.gmra.mxu1 %v1224_v19  ;;  %v1378_v23 = vand.u32 4294901760, %v397_v12  ;;  %v519_v54 = vsub.f32 %v1391_v27, %v518_v40 }
  0x1b   :  { %359 = vmatpush.msra.mxu2 %v272_v31  ;;  %325 = vmatpush.msra.mxu1 %v1216_v15  ;;  %v396_v15 = vld [vmem:[%s1874_s3 + $0x28] sm:$0xff]  ;;  %v501_v31 = vsub.f32 %v1345_v9, %v500_v22 }
  0x1c   :  { %383 = vmatpush.msra.mxu3 %v1218_v16  ;;  %361 = vmatmul.f32.vlgmr.msra.gmra.mxu2 %v1224_v19  ;;  %v1393_v28 = vand.u32 4294901760, %v396_v15  ;;  %v1406_v32 = vsub.f32 %v397_v12, %v1378_v23  ;;  %v1468_v12 = vand.u32 4294901760, %v391_v50 }
  0x1d   :  { %385 = vmatmul.f32.vlgmr.msra.gmra.mxu3 %v1224_v19  ;;  %327 = vmatpush.msra.mxu1 %v1218_v16  ;;  %v506_v19 = vand.u32 4294901760, %v1351_v11  ;;  %v484_v16 = vand.u32 4294901760, %v483_v13  ;;  %v502_v43 = vand.u32 4294901760, %v501_v31  ;;  %v1877_v13 = vand.u32 4294901760, %v1443_v48 }
  0x1e   :  { %571 = vmatpush.msrb.mxu2 %v1274_v49  ;;  %624 = vmatpush.msrb.mxu3 %v1258_v39  ;;  %v1423_v41 = vsub.f32 %v396_v15, %v1393_v28  ;;  %v524_v46 = vand.u32 4294901760, %v1406_v32  ;;  %v520_v15 = vand.u32 4294901760, %v519_v54  ;;  %v1889_v49 = vand.u32 4294901760, %v1438_v47 }
  0x1f   :  { %473 = vmatpush.msrb.mxu1 %v472_v10  ;;  %428 = vmatpush.msrb.mxu0 %v1258_v39  ;;  %v507_v38 = vsub.f32 %v1351_v11, %v506_v19  ;;  %v1880_v10 = vand.u32 4294901760, %v1438_v47 }
  0x20   :  { %305 = vmatmul.f32.vlgmr.msra.gmra.mxu0 %v1237_v25  ;;  %574 = vmatpush.msrb.mxu2 %v1283_v53  ;;  %v512_v25 = vand.u32 4294901760, %v1367_v20  ;;  %v530_v57 = vand.u32 4294901760, %v1423_v41  ;;  %v525_v7 = vsub.f32 %v1406_v32, %v524_v46 }
  0x21   :  { %479 = vmatpush.msrb.mxu1 %v478_v18  ;;  %626 = vmatpush.msrb.mxu3 %v1267_v45  ;;  %v508_v51 = vand.u32 4294901760, %v507_v38  ;;  %v421_v18 = vld [vmem:[%s1874_s3 + $0xf0] sm:$0xff]  ;;  %v537_v31 = vsub.f32 %v1438_v47, %v1880_v10  ;;  %v543_v38 = vsub.f32 %v1443_v48, %v1877_v13 }
  0x22   :  { %577 = vmatpush.msrb.mxu2 %v1299_v58  ;;  %331 = vmatmul.f32.vlgmr.msra.gmra.mxu1 %v1248_v33  ;;  %v1427_v33 = vand.u32 4294901760, %v393_v35  ;;  %v513_v44 = vsub.f32 %v1367_v20, %v512_v25  ;;  %v531_v21 = vsub.f32 %v1423_v41, %v530_v57  ;;  %v416_v58 = vld [vmem:[%s1874_s3 + $0xc8] sm:$0xff] }
  0x23   :  { %628 = vmatpush.msrb.mxu3 %v1279_v52  ;;  %485 = vmatpush.msrb.mxu1 %v484_v16  ;;  %v1483_v16 = vand.u32 4294901760, %v422_v1  ;;  %v544_v13 = vand.u32 4294901760, %v543_v38 }
  0x24   :  { %580 = vmatpush.msrb.mxu2 %v1310_v62  ;;  %430 = vmatpush.msrb.mxu0 %v1267_v45  ;;  %v1458_v0 = vsub.f32 %v393_v35, %v1427_v33  ;;  %v514_v5 = vand.u32 4294901760, %v513_v44  ;;  %v1496_v35 = vsub.f32 %v391_v50, %v1468_v12  ;;  %v1879_v44 = vand.u32 4294901760, %v1481_v24  ;;  %v415_v62 = vld [vmem:[%s1874_s3 + $0xc0] sm:$0xff] }
  0x25   :  { %630 = vmatpush.msrb.mxu3 %v1289_v55  ;;  %491 = vmatpush.msrb.mxu1 %v490_v30  ;;  %v526_v30 = vand.u32 4294901760, %v525_v7  ;;  %v1511_v50 = vsub.f32 %v422_v1, %v1483_v16  ;;  %v538_v7 = vand.u32 4294901760, %v537_v31 }
  0x26   :  { %583 = vmatpush.msrb.mxu2 %v1328_v4  ;;  %432 = vmatpush.msrb.mxu0 %v1279_v52  ;;  %v1878_v26 = vand.u32 4294901760, %v1458_v0  ;;  %v1881_v1 = vand.u32 4294901760, %v1496_v35  ;;  %v1891_v53 = vand.u32 4294901760, %v1458_v0  ;;  %v414_v4 = vld [vmem:[%s1874_s3 + $0xb8] sm:$0xff] }
  0x27   :  { %632 = vmatpush.msrb.mxu3 %v1301_v59  ;;  %497 = vmatpush.msrb.mxu1 %v496_v37  ;;  %v1498_v37 = vand.u32 4294901760, %v421_v18  ;;  %v811_v31 = vand.u32 4294901760, %v1511_v50 }
  0x28   :  { %586 = vmatpush.msrb.mxu2 %v1345_v9  ;;  %434 = vmatpush.msrb.mxu0 %v1289_v55  ;;  %v549_v54 = vsub.f32 %v1458_v0, %v1878_v26  ;;  %v1671_v9 = vand.u32 4294901760, %v414_v4 }
  0x29   :  { %634 = vmatpush.msrb.mxu3 %v1312_v63  ;;  %503 = vmatpush.msrb.mxu1 %v502_v43  ;;  %v532_v43 = vand.u32 4294901760, %v531_v21  ;;  %v1528_v21 = vand.u32 4294901760, %v419_v42 }
  0x2a   :  { %589 = vmatpush.msrb.mxu2 %v1351_v11  ;;  %436 = vmatpush.msrb.mxu0 %v1301_v59  ;;  %v550_v38 = vand.u32 4294901760, %v549_v54  ;;  %v812_v54 = vsub.f32 %v1511_v50, %v811_v31 }
  0x2b   :  { %636 = vmatpush.msrb.mxu3 %v1322_v2  ;;  %509 = vmatpush.msrb.mxu1 %v508_v51  ;;  %v1513_v51 = vand.u32 4294901760, %v420_v29  ;;  %v1550_v10 = vsub.f32 %v419_v42, %v1528_v21 }
  0x2c   :  { %592 = vmatpush.msrb.mxu2 %v1367_v20  ;;  %438 = vmatpush.msrb.mxu0 %v1312_v63 }
  0x2d   :  { %638 = vmatpush.msrb.mxu3 %v1336_v6  ;;  %515 = vmatpush.msrb.mxu1 %v514_v5  ;;  %v418_v5 = vld [vmem:[%s1874_s3 + $0xd8] sm:$0xff]  ;;  %v1538_v26 = vsub.f32 %v420_v29, %v1513_v51 }
  0x2e   :  { %595 = vmatpush.msrb.mxu2 %v1391_v27  ;;  %440 = vmatpush.msrb.mxu0 %v1322_v2  ;;  %v412_v27 = vld [vmem:[%s1874_s3 + $0xa8] sm:$0xff] }
  0x2f   :  { %640 = vmatpush.msrb.mxu3 %v1362_v17  ;;  %521 = vmatpush.msrb.mxu1 %v520_v15  ;;  %v1526_v15 = vsub.f32 %v421_v18, %v1498_v37  ;;  %v1540_v18 = vand.u32 4294901760, %v418_v5 }
  0x30   :  { %598 = vmatpush.msrb.mxu2 %v1406_v32  ;;  %442 = vmatpush.msrb.mxu0 %v1336_v6  ;;  %v1696_v32 = vand.u32 4294901760, %v412_v27 }
  0x31   :  { %642 = vmatpush.msrb.mxu3 %v1378_v23  ;;  %527 = vmatpush.msrb.mxu1 %v526_v30  ;;  %v555_v30 = vsub.f32 %v1481_v24, %v1879_v44  ;;  %v1882_v44 = vand.u32 4294901760, %v1526_v15 }
  0x32   :  { %601 = vmatpush.msrb.mxu2 %v1423_v41  ;;  %444 = vmatpush.msrb.mxu0 %v1362_v17 }
  0x33   :  { %644 = vmatpush.msrb.mxu3 %v1393_v28  ;;  %533 = vmatpush.msrb.mxu1 %v532_v43  ;;  %v561_v43 = vsub.f32 %v1496_v35, %v1881_v1  ;;  %v556_v29 = vand.u32 4294901760, %v555_v30  ;;  %v1560_v1 = vsub.f32 %v418_v5, %v1540_v18  ;;  %v829_v30 = vand.u32 4294901760, %v1550_v10 }
  0x34   :  { %604 = vmatpush.msrb.mxu2 %v1438_v47  ;;  %446 = vmatpush.msrb.mxu0 %v1378_v23  ;;  %v813_v5 = vand.u32 4294901760, %v812_v54  ;;  %v1710_v47 = vsub.f32 %v412_v27, %v1696_v32 }
  0x35   :  { %646 = vmatpush.msrb.mxu3 %v1408_v34  ;;  %539 = vmatpush.msrb.mxu1 %v538_v7  ;;  %v1883_v7 = vand.u32 4294901760, %v1538_v26  ;;  %v562_v42 = vand.u32 4294901760, %v561_v43  ;;  %v835_v43 = vand.u32 4294901760, %v1560_v1 }
  0x36   :  { %607 = vmatpush.msrb.mxu2 %v1443_v48  ;;  %448 = vmatpush.msrb.mxu0 %v1393_v28 }
  0x37   :  { %648 = vmatpush.msrb.mxu3 %v1415_v36  ;;  %545 = vmatpush.msrb.mxu1 %v544_v13  ;;  %v818_v13 = vsub.f32 %v1526_v15, %v1882_v44 }
  0x38   :  { %610 = vmatpush.msrb.mxu2 %v1458_v0  ;;  %450 = vmatpush.msrb.mxu0 %v1408_v34  ;;  %v871_v0 = vand.u32 4294901760, %v1710_v47 }
  0x39   :  { %650 = vmatpush.msrb.mxu3 %v1427_v33  ;;  %551 = vmatpush.msrb.mxu1 %v550_v38  ;;  %v824_v38 = vsub.f32 %v1538_v26, %v1883_v7  ;;  %v819_v44 = vand.u32 4294901760, %v818_v13  ;;  %v836_v7 = vsub.f32 %v1560_v1, %v835_v43 }
  0x3a   :  { %613 = vmatpush.msrb.mxu2 %v1481_v24  ;;  %452 = vmatpush.msrb.mxu0 %v1415_v36 }
  0x3b   :  { %652 = vmatpush.msrb.mxu3 %v1453_v60  ;;  %557 = vmatpush.msrb.mxu1 %v556_v29  ;;  %v830_v29 = vsub.f32 %v1550_v10, %v829_v30  ;;  %v825_v54 = vand.u32 4294901760, %v824_v38  ;;  %v837_v13 = vand.u32 4294901760, %v836_v7 }
  0x3c   :  { %616 = vmatpush.msrb.mxu2 %v1496_v35  ;;  %454 = vmatpush.msrb.mxu0 %v1427_v33 }
  0x3d   :  { %563 = vmatpush.msrb.mxu1 %v562_v42  ;;  %654 = vmatpush.msrb.mxu3 %v1468_v12  ;;  %v831_v42 = vand.u32 4294901760, %v830_v29 }
  0x3e   :  { %769 = vmatpush.msra.mxu2 %v1483_v16  ;;  %456 = vmatpush.msrb.mxu0 %v1453_v60 }
  0x3f   :  { %732 = vmatpush.msra.mxu1 %v1258_v39  ;;  %814 = vmatpush.msra.mxu3 %v813_v5  ;;  %v417_v39 = vld [vmem:[%s1874_s3 + $0xd0] sm:$0xff]  ;;  %v872_v5 = vsub.f32 %v1710_v47, %v871_v0 }
  0x40   :  { %771 = vmatpush.msra.mxu2 %v1498_v37  ;;  %458 = vmatpush.msrb.mxu0 %v1468_v12 }
  0x41   :  { %734 = vmatpush.msra.mxu1 %v1267_v45  ;;  %820 = vmatpush.msra.mxu3 %v819_v44  ;;  %v1602_v45 = vand.u32 4294901760, %v417_v39  ;;  %v409_v44 = vld [vmem:[%s1874_s3 + $0x90] sm:$0xff] }
  0x42   :  { %773 = vmatpush.msra.mxu2 %v1513_v51  ;;  %665 = vmatpush.msra.mxu0 %v470_v56  ;;  %v1893_v56 = vand.u32 4294901760, %v1496_v35  ;;  %v1736_v29 = vand.u32 4294901760, %v409_v44 }
  0x43   :  { %736 = vmatpush.msra.mxu1 %v1279_v52  ;;  %826 = vmatpush.msra.mxu3 %v825_v54  ;;  %v1890_v52 = vand.u32 4294901760, %v1443_v48 }
  0x44   :  { %775 = vmatpush.msra.mxu2 %v1528_v21  ;;  %669 = vmatpush.msra.mxu0 %v476_v61  ;;  %v1651_v61 = vsub.f32 %v417_v39, %v1602_v45  ;;  %v873_v39 = vand.u32 4294901760, %v872_v5 }
  0x45   :  { %738 = vmatpush.msra.mxu1 %v1289_v55  ;;  %832 = vmatpush.msra.mxu3 %v831_v42  ;;  %v1892_v55 = vand.u32 4294901760, %v1481_v24  ;;  %v408_v42 = vld [vmem:[%s1874_s3 + $0x88] sm:$0xff] }
  0x46   :  { %777 = vmatpush.msra.mxu2 %v1540_v18  ;;  %673 = vmatpush.msra.mxu0 %v482_v3 }
  0x47   :  { %740 = vmatpush.msra.mxu1 %v1301_v59  ;;  %838 = vmatpush.msra.mxu3 %v837_v13  ;;  %v1648_v59 = vand.u32 4294901760, %v416_v58 }
  0x48   :  { %779 = vmatpush.msra.mxu2 %v1602_v45  ;;  %677 = vmatpush.msra.mxu0 %v488_v8 }
  0x49   :  { %742 = vmatpush.msra.mxu1 %v1312_v63  ;;  %v841_v63 = vand.u32 4294901760, %v1651_v61  ;;  %v1661_v3 = vsub.f32 %v416_v58, %v1648_v59  ;;  %v407_v58 = vld [vmem:[%s1874_s3 + $0x80] sm:$0xff] }
  0x4a   :  { %681 = vmatpush.msra.mxu0 %v494_v14  ;;  %781 = vmatpush.msra.mxu2 %v1648_v59  ;;  %v413_v14 = vld [vmem:[%s1874_s3 + $0xb0] sm:$0xff] }
  0x4b   :  { %744 = vmatpush.msra.mxu1 %v1322_v2  ;;  %v1658_v2 = vand.u32 4294901760, %v415_v62  ;;  %v847_v8 = vand.u32 4294901760, %v1661_v3 }
  0x4c   :  { %685 = vmatpush.msra.mxu0 %v500_v22 }
  0x4d   :  { %746 = vmatpush.msra.mxu1 %v1336_v6  ;;  %v842_v6 = vsub.f32 %v1651_v61, %v841_v63  ;;  %783 = vmatpush.msra.mxu2 %v1658_v2  ;;  %v1674_v11 = vsub.f32 %v415_v62, %v1658_v2  ;;  %v848_v20 = vsub.f32 %v1661_v3, %v847_v8 }
  0x4e   :  { %689 = vmatpush.msra.mxu0 %v506_v19  ;;  %v1687_v19 = vsub.f32 %v414_v4, %v1671_v9  ;;  %v1762_v4 = vand.u32 4294901760, %v407_v58 }
  0x4f   :  { %748 = vmatpush.msra.mxu1 %v1362_v17  ;;  %v843_v17 = vand.u32 4294901760, %v842_v6  ;;  %785 = vmatpush.msra.mxu2 %v1671_v9  ;;  %v853_v22 = vand.u32 4294901760, %v1674_v11 }
  0x50   :  { %693 = vmatpush.msra.mxu0 %v512_v25  ;;  %v1773_v27 = vsub.f32 %v407_v58, %v1762_v4 }
  0x51   :  { %750 = vmatpush.msra.mxu1 %v1378_v23  ;;  %v1684_v23 = vand.u32 4294901760, %v413_v14  ;;  %844 = vmatpush.msra.mxu3 %v843_v17  ;;  %v854_v25 = vsub.f32 %v1674_v11, %v853_v22 }
  0x52   :  { %697 = vmatpush.msra.mxu0 %v518_v40  ;;  %v411_v40 = vld [vmem:[%s1874_s3 + $0xa0] sm:$0xff] }
  0x53   :  { %752 = vmatpush.msra.mxu1 %v1393_v28  ;;  %v849_v28 = vand.u32 4294901760, %v848_v20  ;;  %787 = vmatpush.msra.mxu2 %v1684_v23  ;;  %v855_v41 = vand.u32 4294901760, %v854_v25 }
  0x54   :  { %701 = vmatpush.msra.mxu0 %v524_v46  ;;  %v1707_v46 = vand.u32 4294901760, %v411_v40 }
  0x55   :  { %754 = vmatpush.msra.mxu1 %v1408_v34  ;;  %v1699_v34 = vsub.f32 %v413_v14, %v1684_v23  ;;  %850 = vmatpush.msra.mxu3 %v849_v28 }
  0x56   :  { %705 = vmatpush.msra.mxu0 %v530_v57  ;;  %789 = vmatpush.msra.mxu2 %v1696_v32  ;;  %v410_v57 = vld [vmem:[%s1874_s3 + $0x98] sm:$0xff]  ;;  %v1726_v24 = vsub.f32 %v411_v40, %v1707_v46  ;;  %v1884_v40 = vand.u32 4294901760, %v1773_v27 }
  0x57   :  { %756 = vmatpush.msra.mxu1 %v1415_v36  ;;  %v859_v36 = vand.u32 4294901760, %v1687_v19  ;;  %856 = vmatpush.msra.mxu3 %v855_v41 }
  0x58   :  { %709 = vmatpush.msra.mxu0 %v1889_v49  ;;  %791 = vmatpush.msra.mxu2 %v1707_v46  ;;  %v1888_v38 = vand.u32 4294901760, %v1726_v24  ;;  %v1748_v49 = vand.u32 4294901760, %v408_v42 }
  0x59   :  { %758 = vmatpush.msra.mxu1 %v1427_v33  ;;  %v865_v33 = vand.u32 4294901760, %v1699_v34  ;;  %v860_v48 = vsub.f32 %v1687_v19, %v859_v36 }
  0x5a   :  { %713 = vmatpush.msra.mxu0 %v1890_v52  ;;  %v878_v13 = vsub.f32 %v1726_v24, %v1888_v38  ;;  %v1751_v52 = vsub.f32 %v409_v44, %v1736_v29  ;;  %v1765_v6 = vsub.f32 %v408_v42, %v1748_v49 }
  0x5b   :  { %760 = vmatpush.msra.mxu1 %v1453_v60  ;;  %v866_v60 = vsub.f32 %v1699_v34, %v865_v33  ;;  %v861_v35 = vand.u32 4294901760, %v860_v48  ;;  %v902_v48 = vsub.f32 %v1773_v27, %v1884_v40 }
  0x5c   :  { %717 = vmatpush.msra.mxu0 %v1891_v53  ;;  %v1885_v20 = vand.u32 4294901760, %v1765_v6 }
  0x5d   :  { %762 = vmatpush.msra.mxu1 %v1468_v12  ;;  %v1723_v12 = vand.u32 4294901760, %v410_v57  ;;  %v867_v7 = vand.u32 4294901760, %v866_v60  ;;  %862 = vmatpush.msra.mxu3 %v861_v35  ;;  %v28_v60 = vld [vmem:[%s1873_s2] sm:$0x3] }
  0x5e   :  { %721 = vmatpush.msra.mxu0 %v1892_v55  ;;  %v879_v55 = vand.u32 4294901760, %v878_v13  ;;  %v896_v25 = vsub.f32 %v1765_v6, %v1885_v20  ;;  %v30_v35 = vperm.slane %v28_v60, 0 }
  0x5f   :  { %793 = vmatpush.msra.mxu2 %v1723_v12  ;;  %v1739_v54 = vsub.f32 %v410_v57, %v1723_v12  ;;  %868 = vmatpush.msra.mxu3 %v867_v7  ;;  %v903_v57 = vand.u32 4294901760, %v902_v48 }
  0x60   :  { %725 = vmatpush.msra.mxu0 %v1893_v56  ;;  %v1886_v56 = vand.u32 4294901760, %v1751_v52  ;;  %v897_v41 = vand.u32 4294901760, %v896_v25 }
  0x61   :  { %795 = vmatpush.msra.mxu2 %v1736_v29  ;;  %v1887_v53 = vand.u32 4294901760, %v1739_v54  ;;  %874 = vmatpush.msra.mxu3 %v873_v39 }
  0x62   :  { %v890_v14 = vsub.f32 %v1751_v52, %v1886_v56 }
  0x63   :  { %797 = vmatpush.msra.mxu2 %v1748_v49  ;;  %v884_v62 = vsub.f32 %v1739_v54, %v1887_v53  ;;  %880 = vmatpush.msra.mxu3 %v879_v55 }
  0x64   :  { %v891_v28 = vand.u32 4294901760, %v890_v14  ;;  %v31_v14 = vperm.slane %v28_v60, 1 }
  0x65   :  { %v885_v17 = vand.u32 4294901760, %v884_v62  ;;  %799 = vmatpush.msra.mxu2 %v1762_v4 }
  0x67   :  { %886 = vmatpush.msra.mxu3 %v885_v17 }
  0x69   :  { %892 = vmatpush.msra.mxu3 %v891_v28 }
  0x6b   :  { %898 = vmatpush.msra.mxu3 %v897_v41 }
  0x6d   :  { %904 = vmatpush.msra.mxu3 %v903_v57 }
  0x8d   :  { %v70_v44 = vpop.f32.mrf.mxu0 }
  0x8e   :  { %v71_v7 = vadd.f32 %v70_v44, %v30_v35 }
  0x8f   :  { %v160_v5 = vpop.f32.mrf.mxu3  ;;  %v106_v42 = vpop.f32.mrf.mxu1 }
  0x90   :  { %v134_v39 = vpop.f32.mrf.mxu2  ;;  %v107_v13 = vadd.f32 %v106_v42, %v71_v7 }
  0x92   :  { %v135_v55 = vadd.f32 %v134_v39, %v107_v13 }
  0x94   :  { %v161_v58 = vadd.f32 %v160_v5, %v135_v55 }
  0x95   :  { %v190_v62 = vpop.f32.mrf.mxu0 }
  0x96   :  { %v191_v17 = vadd.f32 %v190_v62, %v161_v58 }
  0x97   :  { %v214_v28 = vpop.f32.mrf.mxu1 }
  0x98   :  { %v242_v25 = vpop.f32.mrf.mxu2  ;;  %v215_v41 = vadd.f32 %v214_v28, %v191_v17  ;;  %v278_v57 = vpop.f32.mrf.mxu3 }
  0x99   :  { %v243_v48 = vadd.f32 %v242_v25, %v31_v14 }
  0x9a   :  { %v389_v40 = vmax.f32 %v215_v41, 0.0 }
  0x9b   :  { %v279_v20 = vadd.f32 %v278_v57, %v243_v48 }
  0x9c   :  { %v459_v56 = vand.u32 4294901760, %v389_v40 }
  0x9d   :  { %v306_v53 = vpop.f32.mrf.mxu0 }
  0x9e   :  { %v307_v38 = vadd.f32 %v306_v53, %v279_v20  ;;  %v460_v35 = vsub.f32 %v389_v40, %v459_v56  ;;  %565 = vmatmul.f32.vlgmr.msrb.gmra.mxu1 %v459_v56  ;;  %v1894_v53 = vand.u32 4294901760, %v1526_v15 }
  0x9f   :  { %965 = vmatpush.msrb.mxu1 %v1483_v16  ;;  %v332_v44 = vpop.f32.mrf.mxu1 }
  0xa0   :  { %v362_v7 = vpop.f32.mrf.mxu2  ;;  %v461_v5 = vand.u32 4294901760, %v460_v35  ;;  %v333_v42 = vadd.f32 %v332_v44, %v307_v38  ;;  %619 = vmatmul.f32.vlgmr.msrb.gmra.mxu2 %v460_v35  ;;  %v386_v60 = vpop.f32.mrf.mxu3  ;;  %v1895_v38 = vand.u32 4294901760, %v1538_v26 }
  0xa1   :  { %967 = vmatpush.msrb.mxu1 %v1498_v37  ;;  %1006 = vmatpush.msrb.mxu2 %v811_v31 }
  0xa2   :  { %v462_v39 = vsub.f32 %v460_v35, %v461_v5  ;;  %v363_v13 = vadd.f32 %v362_v7, %v333_v42  ;;  %658 = vmatmul.f32.vlgmr.msrb.gmra.mxu3 %v461_v5 }
  0xa3   :  { %969 = vmatpush.msrb.mxu1 %v1513_v51  ;;  %1010 = vmatpush.msrb.mxu2 %v1894_v53 }
  0xa4   :  { %1073 = vmatpush.msrb.mxu3 %v1483_v16  ;;  %v387_v20 = vadd.f32 %v386_v60, %v363_v13  ;;  %v463_v40 = vand.u32 4294901760, %v462_v39 }
  0xa5   :  { %971 = vmatpush.msrb.mxu1 %v1528_v21  ;;  %1014 = vmatpush.msrb.mxu2 %v1895_v38 }
  0xa6   :  { %v390_v55 = vmax.f32 %v387_v20, 0.0  ;;  %1075 = vmatpush.msrb.mxu3 %v1498_v37  ;;  %464 = vmatmul.f32.vlgmr.msrb.gmra.mxu0 %v463_v40 }
  0xa7   :  { %764 = vmatmul.f32.vlgmr.msra.gmra.mxu1 %v459_v56  ;;  %912 = vmatpush.msrb.mxu0 %v1511_v50 }
  0xa8   :  { %v800_v31 = vand.u32 4294901760, %v390_v55  ;;  %973 = vmatpush.msrb.mxu1 %v1540_v18  ;;  %1018 = vmatpush.msrb.mxu2 %v829_v30 }
  0xa9   :  { %1077 = vmatpush.msrb.mxu3 %v1513_v51  ;;  %915 = vmatpush.msrb.mxu0 %v1526_v15  ;;  %v1897_v51 = vand.u32 4294901760, %v1739_v54  ;;  %v1899_v15 = vand.u32 4294901760, %v1765_v6 }
  0xaa   :  { %v801_v16 = vsub.f32 %v390_v55, %v800_v31  ;;  %975 = vmatpush.msrb.mxu1 %v1602_v45  ;;  %1022 = vmatpush.msrb.mxu2 %v835_v43 }
  0xab   :  { %1079 = vmatpush.msrb.mxu3 %v1528_v21  ;;  %918 = vmatpush.msrb.mxu0 %v1538_v26  ;;  %v1900_v21 = vand.u32 4294901760, %v1773_v27 }
  0xac   :  { %v802_v37 = vand.u32 4294901760, %v801_v16  ;;  %977 = vmatpush.msrb.mxu1 %v1648_v59  ;;  %1026 = vmatpush.msrb.mxu2 %v841_v63 }
  0xad   :  { %1081 = vmatpush.msrb.mxu3 %v1540_v18  ;;  %921 = vmatpush.msrb.mxu0 %v1550_v10  ;;  %v1896_v10 = vand.u32 4294901760, %v1726_v24  ;;  %v1128_v18 = vld [vmem:[%s1875_s4] ss:$0 sm:$0xff]  ;;  %s1155_s4 = smov [#allocation2]  }
  0xae   :  { %v803_v50 = vsub.f32 %v801_v16, %v802_v37  ;;  %979 = vmatpush.msrb.mxu1 %v1658_v2  ;;  %1030 = vmatpush.msrb.mxu2 %v847_v8  ;;  %s1116_s17 = sshll.u32 %s1155_s4, 4  ;;  %s1117_s17 = int_to_ptr.vmem [resolvable:$true] %s1116_s17 }
  0xaf   :  { %1083 = vmatpush.msrb.mxu3 %v1602_v45  ;;  %727 = vmatmul.f32.vlgmr.msra.gmra.mxu0 %v459_v56 }
  0xb0   :  { %924 = vmatpush.msrb.mxu0 %v1560_v1  ;;  %981 = vmatpush.msrb.mxu1 %v1671_v9  ;;  %v804_v26 = vand.u32 4294901760, %v803_v50  ;;  %v1898_v1 = vand.u32 4294901760, %v1751_v52 }
  0xb1   :  { %1034 = vmatpush.msrb.mxu2 %v853_v22  ;;  %1085 = vmatpush.msrb.mxu3 %v1648_v59 }
  0xb2   :  { %927 = vmatpush.msrb.mxu0 %v1651_v61  ;;  %983 = vmatpush.msrb.mxu1 %v1684_v23 }
  0xb3   :  { %1038 = vmatpush.msrb.mxu2 %v859_v36  ;;  %1087 = vmatpush.msrb.mxu3 %v1658_v2 }
  0xb4   :  { %805 = vmatmul.f32.vlgmr.msra.gmra.mxu2 %v804_v26  ;;  %930 = vmatpush.msrb.mxu0 %v1661_v3 }
  0xb5   :  { %985 = vmatpush.msrb.mxu1 %v1696_v32  ;;  %1042 = vmatpush.msrb.mxu2 %v865_v33 }
  0xb6   :  { %1089 = vmatpush.msrb.mxu3 %v1671_v9  ;;  %933 = vmatpush.msrb.mxu0 %v1674_v11 }
  0xb7   :  { %906 = vmatmul.f32.vlgmr.msra.gmra.mxu3 %v800_v31  ;;  %987 = vmatpush.msrb.mxu1 %v1707_v46 }
  0xb8   :  { %1046 = vmatpush.msrb.mxu2 %v871_v0  ;;  %1091 = vmatpush.msrb.mxu3 %v1684_v23 }
  0xb9   :  { %936 = vmatpush.msrb.mxu0 %v1687_v19  ;;  %989 = vmatpush.msrb.mxu1 %v1723_v12 }
  0xba   :  { %1050 = vmatpush.msrb.mxu2 %v1896_v10  ;;  %1093 = vmatpush.msrb.mxu3 %v1696_v32 }
  0xbb   :  { %939 = vmatpush.msrb.mxu0 %v1699_v34  ;;  %991 = vmatpush.msrb.mxu1 %v1736_v29 }
  0xbc   :  { %1054 = vmatpush.msrb.mxu2 %v1897_v51  ;;  %1095 = vmatpush.msrb.mxu3 %v1707_v46 }
  0xbd   :  { %942 = vmatpush.msrb.mxu0 %v1710_v47  ;;  %993 = vmatpush.msrb.mxu1 %v1748_v49 }
  0xbe   :  { %1058 = vmatpush.msrb.mxu2 %v1898_v1  ;;  %1097 = vmatpush.msrb.mxu3 %v1723_v12 }
  0xbf   :  { %945 = vmatpush.msrb.mxu0 %v1726_v24  ;;  %995 = vmatpush.msrb.mxu1 %v1762_v4 }
  0xc0   :  { %1062 = vmatpush.msrb.mxu2 %v1899_v15  ;;  %1099 = vmatpush.msrb.mxu3 %v1736_v29 }
  0xc1   :  { %999 = vmatmul.f32.vlgmr.msrb.gmra.mxu1 %v802_v37  ;;  %948 = vmatpush.msrb.mxu0 %v1739_v54 }
  0xc2   :  { %1066 = vmatpush.msrb.mxu2 %v1900_v21  ;;  %1101 = vmatpush.msrb.mxu3 %v1748_v49 }
  0xc3   :  { %1068 = vmatmul.f32.vlgmr.msrb.gmra.mxu2 %v800_v31  ;;  %951 = vmatpush.msrb.mxu0 %v1751_v52 }
  0xc4   :  { %1103 = vmatpush.msrb.mxu3 %v1762_v4 }
  0xc5   :  { %1105 = vmatmul.f32.vlgmr.msrb.gmra.mxu3 %v800_v31  ;;  %954 = vmatpush.msrb.mxu0 %v1765_v6 }
  0xc7   :  { %957 = vmatpush.msrb.mxu0 %v1773_v27 }
  0xc8   :  { %960 = vmatmul.f32.vlgmr.msrb.gmra.mxu0 %v801_v16 }
 0x11b   :  { %v566_v45 = vpop.f32.mrf.mxu1 }
 0x123   :  { %v465_v30 = vpop.f32.mrf.mxu0  ;;  %v620_v61 = vpop.f32.mrf.mxu2 }
 0x124   :  { %v466_v43 = vadd.f32 %v1128_v18, %v465_v30  ;;  %v765_v11 = vpop.f32.mrf.mxu1 }
 0x125   :  { %v659_v2 = vpop.f32.mrf.mxu3 }
 0x126   :  { %v567_v59 = vadd.f32 %v566_v45, %v466_v43 }
 0x128   :  { %v621_v63 = vadd.f32 %v620_v61, %v567_v59 }
 0x12a   :  { %v660_v3 = vadd.f32 %v659_v2, %v621_v63 }
 0x12c   :  { %v728_v8 = vpop.f32.mrf.mxu0 }
 0x12d   :  { %v729_v9 = vadd.f32 %v728_v8, %v660_v3 }
 0x12f   :  { %v766_v23 = vadd.f32 %v765_v11, %v729_v9 }
 0x137   :  { %v806_v22 = vpop.f32.mrf.mxu2 }
 0x138   :  { %v807_v19 = vadd.f32 %v806_v22, %v766_v23 }
 0x13a   :  { %v907_v32 = vpop.f32.mrf.mxu3 }
 0x13b   :  { %v908_v34 = vadd.f32 %v907_v32, %v807_v19 }
 0x13e   :  { %v1000_v46 = vpop.f32.mrf.mxu1 }
 0x145   :  { %v961_v36 = vpop.f32.mrf.mxu0 }
 0x146   :  { %v962_v33 = vadd.f32 %v961_v36, %v908_v34  ;;  %v1069_v0 = vpop.f32.mrf.mxu2 }
 0x148   :  { %v1001_v47 = vadd.f32 %v1000_v46, %v962_v33  ;;  %v1106_v24 = vpop.f32.mrf.mxu3 }
 0x14a   :  { %v1070_v12 = vadd.f32 %v1069_v0, %v1001_v47 }
 0x14c   :  { %v1107_v29 = vadd.f32 %v1106_v24, %v1070_v12 }
 0x14e   :  { %1110 = vst.msk [vmem:[#allocation2] sm:$0x3] %vm1109_vm2, %v1107_v29 }
 0x14f   :  { %1121 = dma.vmem_to_hbm [thread:$0]  %s1117_s17, 32, %s1119_s20, [#allocation3]  }
 0x150   :  { %1153 = dma.done.wait [#allocation3], 32  }
 0x151   :  { %1154 = vsyncadd [#allocation3], 4294967264 }
 0x152   :  { %1126 = vsyncpa [#allocation3], 1 }

</bundles_post_ra>
